<compile_context>
chip_gen: v7x
topology: tpu7x:2x2x1
jax: 0.10.0
libtpu: 0.0.40
codegen_flags: <defaults>
</compile_context>

<pallas_src>
import math

import jax
import jax.numpy as jnp
from jax.experimental import pallas as pl
from jax.experimental.pallas import tpu as pltpu

LANE = 128
BLOCK_ROWS = 4096        # (4096, 128) f32 block = 2 MiB per input per buffer


def _num_tensorcores():
    """Best-effort TensorCore count of the local chip (v7x has 2, else 1)."""
    try:
        kind = jax.devices()[0].device_kind.lower()
    except Exception:
        return 1
    return 2 if "v7" in kind else 1


def _make_focal_kernel(n, block_rows, blocks_per_split, gamma, threshold,
                       needs_mask, two_axis):
    n_full_rows = n // LANE      # rows that are entirely valid
    lane_rem = n % LANE          # valid lanes in the single partial row
    reduce_groups = (block_rows % 8 == 0)

    def _group_sum(v):
        if reduce_groups:
            # Regroup whole (8,128) tiles and add them: pure VPU vreg adds,
            # no cross-lane/XLU work inside the hot loop.
            return v.reshape(block_rows // 8, 8, LANE).sum(axis=0)
        return v

    def kernel(x_ref, t_ref, o_ref):
        if two_axis:
            split = pl.program_id(0)
            step = pl.program_id(1)
        else:
            split = 0
            step = pl.program_id(0)

        @pl.when(step == 0)
        def _init():
            o_ref[...] = jnp.zeros_like(o_ref)

        x = x_ref[...].astype(jnp.float32)        # logits
        is_pos = t_ref[...] > threshold           # thresholded targets

        # BCE from logits: bce = softplus(where(t, -x, x)), clamped at 100
        # (PyTorch's binary_cross_entropy clamps each log at -100).
        # Stable softplus(s) = max(s, 0) + log(1 + exp(-|s|)); |s| == |x|.
        e = jnp.exp(-jnp.abs(x))                          # EUP exp (shared)
        one_plus_e = 1.0 + e                              # computed once (CSE)
        s = jnp.where(is_pos, -x, x)
        bce = jnp.maximum(s, 0.0) + jnp.log(one_plus_e)   # EUP log
        bce = jnp.minimum(bce, 100.0)

        # (1 - sigmoid(x)) == sigmoid(-x), reusing e = exp(-|x|).
        # approx reciprocal = single EUP push (slot has slack on all gens).
        inv = pl.reciprocal(one_plus_e, approx=True)
        one_minus_p = jnp.where(x >= 0.0, e, 1.0) * inv

        modulator = one_minus_p ** gamma          # int gamma -> multiplies
        contrib = modulator * bce

        if needs_mask:
            # Only boundary / over-range blocks pay the iota+compare+select
            # masking work; interior blocks take the unmasked path.
            blk = split * blocks_per_split + step
            is_boundary = blk * block_rows + block_rows > n_full_rows

            @pl.when(jnp.logical_not(is_boundary))
            def _interior():
                o_ref[0] += _group_sum(contrib)

            @pl.when(is_boundary)
            def _edge():
                row_in_blk = jax.lax.broadcasted_iota(jnp.int32,
                                                      contrib.shape, 0)
                lane = jax.lax.broadcasted_iota(jnp.int32, contrib.shape, 1)
                row = blk * block_rows + row_in_blk
                valid = (row < n_full_rows) | ((row == n_full_rows) &
                                               (lane < lane_rem))
                o_ref[0] += _group_sum(jnp.where(valid, contrib, 0.0))
        else:
            o_ref[0] += _group_sum(contrib)

    return kernel


def focal_loss(preds, targets, *, alpha=0.8, gamma=2, threshold=0.4):
    """Pallas implementation of FocalLoss.forward (returns scalar f32)."""
    assert preds.shape == targets.shape
    n = int(math.prod(preds.shape))

    x = preds.reshape(-1)
    t = targets.reshape(-1)

    lane_rem = n % LANE
    if lane_rem:
        # Only a tiny tail pad (<128 elems) to make the flat length a lane
        # multiple; the aligned common case reshapes for free with no copy.
        pad = LANE - lane_rem
        x = jnp.pad(x, (0, pad))
        t = jnp.pad(t, (0, pad))
    rows = (n + LANE - 1) // LANE
    x2 = x.reshape(rows, LANE)
    t2 = t.reshape(rows, LANE)

    block_rows = BLOCK_ROWS if rows >= BLOCK_ROWS else rows
    total_blocks = pl.cdiv(rows, block_rows)

    # Only split the stream across cores on chips that actually have 2 TCs.
    splits = min(_num_tensorcores(), total_blocks)
    blocks_per_split = pl.cdiv(total_blocks, splits)
    two_axis = splits > 1

    acc_rows = 8 if block_rows % 8 == 0 else block_rows
    # Mask only when the grid logically covers more elements than exist
    # (partial last block, uneven core split, or a lane-tail pad).
    needs_mask = (splits * blocks_per_split * block_rows * LANE) != n

    gamma_val = int(gamma) if float(gamma) == int(gamma) else float(gamma)

    kernel = _make_focal_kernel(n, block_rows, blocks_per_split, gamma_val,
                                float(threshold), needs_mask, two_axis)

    if two_axis:
        grid = (splits, blocks_per_split)

        def in_map(split, step):
            # Clamp so over-split edge steps never request a fully OOB block;
            # their contributions are zeroed by the in-kernel mask.
            return (jnp.minimum(split * blocks_per_split + step,
                                total_blocks - 1), 0)

        out_map = lambda split, step: (split, 0, 0)
        dims = (getattr(pltpu, "CORE_PARALLEL", "parallel"), "arbitrary")
    else:
        grid = (total_blocks,)
        in_map = lambda step: (step, 0)
        out_map = lambda step: (0, 0, 0)
        dims = ("arbitrary",)

    bytes_accessed = (n * (x2.dtype.itemsize + t2.dtype.itemsize)
                      + splits * acc_rows * LANE * 4)

    partials = pl.pallas_call(
        kernel,
        out_shape=jax.ShapeDtypeStruct((splits, acc_rows, LANE), jnp.float32),
        grid_spec=pltpu.PrefetchScalarGridSpec(
            num_scalar_prefetch=0,
            grid=grid,
            in_specs=[
                pl.BlockSpec((block_rows, LANE), in_map),
                pl.BlockSpec((block_rows, LANE), in_map),
            ],
            out_specs=pl.BlockSpec((1, acc_rows, LANE), out_map),
        ),
        compiler_params=pltpu.CompilerParams(dimension_semantics=dims),
        cost_estimate=pl.CostEstimate(flops=14 * n,
                                      transcendentals=3 * n,
                                      bytes_accessed=bytes_accessed),
    )(x2, t2)

    # Tiny cross-lane reduce + alpha/n scale happen once, in XLA.
    return (alpha * jnp.sum(partials) / n).astype(jnp.float32)


def _reference_focal_loss(preds, targets, *, alpha=0.8, gamma=2,
                          threshold=0.4):
    # Faithful transcription of the PyTorch module.
    p = jax.nn.sigmoid(preds.astype(jnp.float32))
    t = (targets.astype(jnp.float32) > threshold).astype(jnp.float32)
    log_p = jnp.maximum(jnp.log(p), -100.0)
    log_1mp = jnp.maximum(jnp.log(1.0 - p), -100.0)
    bce = -(t * log_p + (1.0 - t) * log_1mp)
    focal = alpha * (1.0 - p) ** gamma * bce
    return jnp.mean(focal)


if __name__ == "__main__":
    key = jax.random.PRNGKey(0)
    k1, k2 = jax.random.split(key)
    # NCHW, as a UNet segmentation head would produce: (batch, ch, H, W)
    preds = jax.random.normal(k1, (2, 4, 16, 16), dtype=jnp.float32)     # logits
    targets = jax.random.uniform(k2, (2, 4, 16, 16), dtype=jnp.float32)  # soft masks

    loss = focal_loss(preds, targets)
    jax.block_until_ready(loss)

    ref = _reference_focal_loss(preds, targets)
    # rtol loosened vs. the exact-divide version because one_minus_p now uses
    # the EUP approximate reciprocal (pl.reciprocal(approx=True)).
    assert jnp.allclose(loss, ref, rtol=2e-3, atol=1e-6), (loss, ref)
    print("KERNEL_OK")
</pallas_src>

<mosaic_0001>
module attributes {stable_mosaic.version = 11 : i64} {
  func.func @kernel(%arg0: i32, %arg1: memref<16x128xf32, #tpu.memory_space<vmem>>, %arg2: memref<16x128xf32, #tpu.memory_space<vmem>>, %arg3: memref<1x8x128xf32, #tpu.memory_space<vmem>>) attributes {dimension_semantics = [#tpu.dimension_semantics<arbitrary>], iteration_bounds = array<i64: 1>, scalar_prefetch = 0 : i64, scratch_operands = 0 : i64, tpu.core_type = #tpu.core_type<tc>, window_params = [{transform_indices = @transform_0, window_bounds = array<i64: 16, 128>}, {transform_indices = @transform_1, window_bounds = array<i64: 16, 128>}, {pipeline_mode = #tpu.pipeline_mode<synchronous>, transform_indices = @transform_2, window_bounds = array<i64: 1, 8, 128>}]} {
    %c0_i32 = arith.constant 0 : i32
    %0 = arith.cmpi eq, %arg0, %c0_i32 : i32
    %1 = arith.extui %0 : i1 to i32
    %c0_i32_0 = arith.constant 0 : i32
    %2 = arith.cmpi ne, %1, %c0_i32_0 : i32
    scf.if %2 {
      %cst_18 = arith.constant 0.000000e+00 : f32
      %38 = vector.broadcast %cst_18 : f32 to vector<1x8x128xf32>
      %c0_19 = arith.constant 0 : index
      %c0_20 = arith.constant 0 : index
      %c0_21 = arith.constant 0 : index
      %39 = vector.load %arg3[%c0_19, %c0_20, %c0_21] : memref<1x8x128xf32, #tpu.memory_space<vmem>>, vector<1x8x128xf32>
      tpu.vector_store %arg3[%c0_19, %c0_20, %c0_21], %38 {strides = array<i32>} : memref<1x8x128xf32, #tpu.memory_space<vmem>>, vector<1x8x128xf32>,
    } else {
    }
    %c0 = arith.constant 0 : index
    %c0_1 = arith.constant 0 : index
    %3 = vector.load %arg1[%c0, %c0_1] : memref<16x128xf32, #tpu.memory_space<vmem>>, vector<16x128xf32>
    %c0_2 = arith.constant 0 : index
    %c0_3 = arith.constant 0 : index
    %4 = vector.load %arg2[%c0_2, %c0_3] : memref<16x128xf32, #tpu.memory_space<vmem>>, vector<16x128xf32>
    %cst = arith.constant 4.000000e-01 : f32
    %5 = vector.broadcast %cst : f32 to vector<16x128xf32>
    %6 = arith.cmpf ogt, %4, %5 : vector<16x128xf32>
    %7 = math.absf %3 : vector<16x128xf32>
    %cst_4 = arith.constant 0.000000e+00 : f32
    %8 = vector.broadcast %cst_4 : f32 to vector<16x128xf32>
    %9 = arith.subf %8, %7 : vector<16x128xf32>
    %10 = math.exp %9 : vector<16x128xf32>
    %cst_5 = arith.constant 1.000000e+00 : f32
    %11 = vector.broadcast %cst_5 : f32 to vector<16x128xf32>
    %12 = arith.addf %11, %10 : vector<16x128xf32>
    %cst_6 = arith.constant 0.000000e+00 : f32
    %13 = vector.broadcast %cst_6 : f32 to vector<16x128xf32>
    %14 = arith.subf %13, %3 : vector<16x128xf32>
    %15 = arith.select %6, %14, %3 : vector<16x128xi1>, vector<16x128xf32>
    %cst_7 = arith.constant 0.000000e+00 : f32
    %16 = vector.broadcast %cst_7 : f32 to vector<16x128xf32>
    %17 = arith.maximumf %15, %16 : vector<16x128xf32>
    %18 = math.log %12 : vector<16x128xf32>
    %19 = arith.addf %17, %18 : vector<16x128xf32>
    %cst_8 = arith.constant 1.000000e+02 : f32
    %20 = vector.broadcast %cst_8 : f32 to vector<16x128xf32>
    %21 = arith.minimumf %19, %20 : vector<16x128xf32>
    %22 = tpu.reciprocal %12 {approx = true} : vector<16x128xf32> -> vector<16x128xf32>
    %cst_9 = arith.constant 0.000000e+00 : f32
    %23 = vector.broadcast %cst_9 : f32 to vector<16x128xf32>
    %24 = arith.cmpf oge, %3, %23 : vector<16x128xf32>
    %cst_10 = arith.constant 1.000000e+00 : f32
    %25 = vector.broadcast %cst_10 : f32 to vector<16x128xf32>
    %26 = arith.select %24, %10, %25 : vector<16x128xi1>, vector<16x128xf32>
    %27 = arith.mulf %26, %22 : vector<16x128xf32>
    %28 = arith.mulf %27, %27 : vector<16x128xf32>
    %29 = arith.mulf %28, %21 : vector<16x128xf32>
    %c0_11 = arith.constant 0 : index
    %c0_12 = arith.constant 0 : index
    %c0_13 = arith.constant 0 : index
    %30 = vector.load %arg3[%c0_11, %c0_12, %c0_13] : memref<1x8x128xf32, #tpu.memory_space<vmem>>, vector<1x8x128xf32>
    %31 = vector.shape_cast %30 : vector<1x8x128xf32> to vector<8x128xf32>
    %32 = vector.shape_cast %29 : vector<16x128xf32> to vector<2x8x128xf32>
    %cst_14 = arith.constant dense<0.000000e+00> : vector<8x128xf32>
    %33 = vector.multi_reduction <add>, %32, %cst_14 [0] : vector<2x8x128xf32> to vector<8x128xf32>
    %34 = arith.addf %31, %33 : vector<8x128xf32>
    %c0_15 = arith.constant 0 : index
    %c0_16 = arith.constant 0 : index
    %c0_17 = arith.constant 0 : index
    %35 = vector.load %arg3[%c0_15, %c0_16, %c0_17] : memref<1x8x128xf32, #tpu.memory_space<vmem>>, vector<1x8x128xf32>
    %36 = vector.shape_cast %35 : vector<1x8x128xf32> to vector<8x128xf32>
    %37 = vector.shape_cast %34 : vector<8x128xf32> to vector<1x8x128xf32>
    tpu.vector_store %arg3[%c0_15, %c0_16, %c0_17], %37 {strides = array<i32>} : memref<1x8x128xf32, #tpu.memory_space<vmem>>, vector<1x8x128xf32>,
    return
  }
  func.func @transform_0(%arg0: i32) -> (i32, i32) {
    %c0_i32 = arith.constant 0 : i32
    %c0_i32_0 = arith.constant 0 : i32
    return %arg0, %c0_i32 : i32, i32
  }
  func.func @transform_1(%arg0: i32) -> (i32, i32) {
    %c0_i32 = arith.constant 0 : i32
    %c0_i32_0 = arith.constant 0 : i32
    return %arg0, %c0_i32 : i32, i32
  }
  func.func @transform_2(%arg0: i32) -> (i32, i32, i32) {
    %c0_i32 = arith.constant 0 : i32
    %c0_i32_0 = arith.constant 0 : i32
    %c0_i32_1 = arith.constant 0 : i32
    %c0_i32_2 = arith.constant 0 : i32
    return %c0_i32, %c0_i32_0, %c0_i32_1 : i32, i32, i32
  }
}

</mosaic_0001>

<bundles_post_ra>
// kernel: tpu_custom_call.1
= control target key start
LH: loop header
LB: loop body
LE: loop exit
PB: predicated region body
PF: predicated region fallthrough
CT: control target
= control target key end

     0   :  { %7 = vsyncpa [#allocation3], 0  ;;  %s253_s0 = inlined_call_operand.hbm [shape: f32[16,128], index: 0, kind: input, shape index: {}]   ;;  %s254_s1 = inlined_call_operand.hbm [shape: f32[16,128], index: 1, kind: input, shape index: {}]   ;;  %s255_s2 = inlined_call_operand.hbm [shape: f32[1,8,128], index: 2, kind: output, shape index: {}]  }
   0x1   :  { %8 = vsyncpa [#allocation6], 0 }
   0x2   :  { %9 = vsyncpa [#allocation4], 0  ;;  %s197_s9 = smov [#allocation2]   ;;  %s125_s13 = scalar_lea.hbm %s253_s0, 256 }
   0x3   :  { %s15_s10 = sshll.u32 %s197_s9, 4  ;;  %p126_p0 = scmp.ne.s32.totalorder %s253_s0, %s125_s13  ;;  %s16_s10 = int_to_ptr.vmem [resolvable:$true] %s15_s10 }
   0x4   :  { %p129_p1 = scmp.lt.u32.totalorder %s125_s13, %s253_s0 }
   0x6   :  { %p131_p2 = pnand %p129_p1, %p126_p0 }
   0x8   :  { %134 = shalt.err (!%p131_p2)
}
   0x9   :  { %s135_s18 = scalar_lea.vmem %s16_s10, 256  ;;  %p140_p4 = scmp.lt.s32.totalorder %s16_s10, %s16_s10 }
   0xa   :  { %p136_p3 = scmp.ne.s32.totalorder %s16_s10, %s135_s18  ;;  %p141_p5 = scmp.lt.s32.totalorder %s135_s18, %s135_s18 }
   0xc   :  { %p142_p6 = por %p141_p5, %p140_p4 }
   0xe   :  { %p143_p7 = pnand %p142_p6, %p136_p3 }
  0x10   :  { %146 = shalt.err (!%p143_p7)
}
  0x11   :  { %s198_s19 = smov 128   ;;  %s199_s20 = smov 8  }
  0x12   :  { %21 = dma.hbm_to_vmem [thread:$0]  %s253_s0, 256, %s16_s10, [#allocation3], %s198_s19, %s198_s19, %s199_s20  }
  0x13   :  { %s200_s23 = smov [#allocation5]   ;;  %s147_s27 = scalar_lea.hbm %s254_s1, 256 }
  0x14   :  { %s27_s24 = sshll.u32 %s200_s23, 4  ;;  %p148_p8 = scmp.ne.s32.totalorder %s254_s1, %s147_s27  ;;  %s28_s24 = int_to_ptr.vmem [resolvable:$true] %s27_s24 }
  0x15   :  { %p151_p9 = scmp.lt.u32.totalorder %s147_s27, %s254_s1 }
  0x17   :  { %p153_p10 = pnand %p151_p9, %p148_p8 }
  0x19   :  { %156 = shalt.err (!%p153_p10)
}
  0x1a   :  { %s157_s4 = scalar_lea.vmem %s28_s24, 256  ;;  %p162_p12 = scmp.lt.s32.totalorder %s28_s24, %s28_s24 }
  0x1b   :  { %p158_p11 = scmp.ne.s32.totalorder %s28_s24, %s157_s4  ;;  %p163_p13 = scmp.lt.s32.totalorder %s157_s4, %s157_s4 }
  0x1d   :  { %p164_p0 = por %p163_p13, %p162_p12 }
  0x1f   :  { %p165_p1 = pnand %p164_p0, %p158_p11 }
  0x21   :  { %168 = shalt.err (!%p165_p1)
}
  0x22   :  { %33 = dma.hbm_to_vmem [thread:$0]  %s254_s1, 256, %s28_s24, [#allocation6], %s198_s19, %s198_s19, %s199_s20  }
  0x23   :  { %191 = dma.done.wait [#allocation3], 256  }
  0x24   :  { %192 = vsyncadd [#allocation3], 4294967040 }
  0x25   :  { %193 = dma.done.wait [#allocation6], 256  }
  0x26   :  { %194 = vsyncadd [#allocation6], 4294967040  ;;  %v45_v0 = vld [vmem:[#allocation2] sm:$0xff]  ;;  %v46_v1 = vld [vmem:[#allocation2 + $0x8] sm:$0xff]  ;;  %s201_s1 = smov [#allocation7]  }
  0x27   :  { %v51_v2 = vand.u32 2147483647, %v45_v0  ;;  %v52_v3 = vand.u32 2147483647, %v46_v1  ;;  %v47_v12 = vld [vmem:[#allocation5] sm:$0xff]  ;;  %v48_v13 = vld [vmem:[#allocation5 + $0x8] sm:$0xff] }
  0x28   :  { %v61_v14 = vsub.f32 0.0, %v45_v0  ;;  %vm49_vm0 = vcmp.gt.f32.partialorder %v47_v12, 0.4  ;;  %v62_v15 = vsub.f32 0.0, %v46_v1  ;;  %vm50_vm1 = vcmp.gt.f32.partialorder %v48_v13, 0.4 }
  0x29   :  { %v53_v4 = vsub.f32 0.0, %v51_v2  ;;  %v54_v5 = vsub.f32 0.0, %v52_v3  ;;  %vm77_vm2 = vcmp.ge.f32.partialorder %v45_v0, 0.0  ;;  %vm78_vm3 = vcmp.ge.f32.partialorder %v46_v1, 0.0  ;;  %s97_s6 = sshll.u32 %s201_s1, 4  ;;  %s98_s6 = int_to_ptr.vmem [resolvable:$true] %s97_s6 }
  0x2a   :  { %v63_v16 = vsel %vm49_vm0, %v61_v14, %v45_v0  ;;  %v64_v17 = vsel %vm50_vm1, %v62_v15, %v46_v1  ;;  %s169_s7 = scalar_lea.vmem %s98_s6, 128  ;;  %p174_p3 = scmp.lt.s32.totalorder %s98_s6, %s98_s6 }
  0x2b   :  { %v55_v6 = vmul.f32 1.442695, %v53_v4  ;;  %v57_v7 = vmul.f32 1.442695, %v54_v5  ;;  %v65_v18 = vmax.f32 %v63_v16, 0.0  ;;  %v66_v20 = vmax.f32 %v64_v17, 0.0  ;;  %p170_p2 = scmp.ne.s32.totalorder %s98_s6, %s169_s7  ;;  %p175_p4 = scmp.lt.s32.totalorder %s169_s7, %s169_s7 }
  0x2d   :  { %113 = vpow2.f32 %v55_v6  ;;  %p176_p5 = por %p175_p4, %p174_p3 }
  0x2e   :  { %115 = vpow2.f32 %v57_v7 }
  0x2f   :  { %p177_p6 = pnand %p176_p5, %p170_p2 }
  0x37   :  { %v114_v8 = vpop.eup %113 }
  0x38   :  { %v116_v9 = vpop.eup %115  ;;  %v59_v10 = vadd.f32 1.0, %v114_v8  ;;  %v79_v21 = vsel %vm77_vm2, %v114_v8, 1.0 }
  0x39   :  { %v60_v11 = vadd.f32 1.0, %v116_v9  ;;  %v80_v24 = vsel %vm78_vm3, %v116_v9, 1.0 }
  0x3a   :  { %117 = vlog2.f32 %v59_v10 }
  0x3b   :  { %119 = vlog2.f32 %v60_v11 }
  0x3c   :  { %121 = vrcp.f32 %v59_v10 }
  0x3d   :  { %123 = vrcp.f32 %v60_v11 }
  0x44   :  { %v118_v19 = vpop.eup %117 }
  0x45   :  { %v120_v22 = vpop.eup %119  ;;  %v68_v23 = vmul.f32 0.6931472, %v118_v19 }
  0x46   :  { %v122_v25 = vpop.eup %121  ;;  %v70_v26 = vmul.f32 0.6931472, %v120_v22 }
  0x47   :  { %v124_v27 = vpop.eup %123  ;;  %v71_v28 = vadd.f32 %v68_v23, %v65_v18  ;;  %v81_v29 = vmul.f32 %v122_v25, %v79_v21 }
  0x48   :  { %v72_v30 = vadd.f32 %v70_v26, %v66_v20  ;;  %v82_v31 = vmul.f32 %v124_v27, %v80_v24 }
  0x49   :  { %v73_v32 = vmin.f32 %v71_v28, 100.0  ;;  %v83_v33 = vmul.f32 %v81_v29, %v81_v29 }
  0x4a   :  { %v74_v34 = vmin.f32 %v72_v30, 100.0  ;;  %v84_v35 = vmul.f32 %v82_v31, %v82_v31 }
  0x4b   :  { %v85_v36 = vmul.f32 %v83_v33, %v73_v32 }
  0x4c   :  { %v86_v37 = vmul.f32 %v84_v35, %v74_v34 }
  0x4e   :  { %v88_v38 = vadd.f32 %v86_v37, %v85_v36 }
  0x50   :  { %90 = vst [vmem:[#allocation7] sm:$0xff] %v88_v38 }
  0x51   :  { %180 = shalt.err (!%p177_p6)
}
  0x52   :  { %s181_s10 = scalar_lea.hbm %s255_s2, 128 }
  0x53   :  { %p182_p7 = scmp.ne.s32.totalorder %s255_s2, %s181_s10  ;;  %p185_p8 = scmp.lt.u32.totalorder %s181_s10, %s255_s2 }
  0x55   :  { %p187_p9 = pnand %p185_p8, %p182_p7 }
  0x57   :  { %190 = shalt.err (!%p187_p9)
}
  0x58   :  { %100 = dma.vmem_to_hbm [thread:$0]  %s98_s6, 128, %s255_s2, [#allocation4]  }
  0x59   :  { %195 = dma.done.wait [#allocation4], 128  }
  0x5a   :  { %196 = vsyncadd [#allocation4], 4294967168 }
  0x5b   :  { %104 = vsyncpa [#allocation3], 1 }
  0x5c   :  { %105 = vsyncpa [#allocation6], 1 }
  0x5d   :  { %106 = vsyncpa [#allocation4], 1 }

</bundles_post_ra>
